<compile_context>
chip_gen: v6e
topology: v6e:2x2x1
jax: 0.10.0
libtpu: 0.0.40
codegen_flags: <defaults>
</compile_context>

<pallas_src>
import jax
import jax.numpy as jnp
from jax.experimental import pallas as pl
from jax.experimental.pallas import tpu as pltpu

# ----------------------------------------------------------------------------
# Module hyper-parameters (match AFNO2D.__init__ defaults, small test sizes)
# ----------------------------------------------------------------------------
HIDDEN_SIZE = 32          # C
NUM_BLOCKS = 8
BLOCK_SIZE = HIDDEN_SIZE // NUM_BLOCKS
SPARSITY_THRESHOLD = 0.01
HARD_THRESHOLD_FRACTION = 1   # default -> kept_modes == total_modes -> full slices
HIDDEN_SIZE_FACTOR = 1
RES_MULT = 1
SCALE = 0.02

TOKEN_TILE = 1024         # token (lane) tile; multiple of 128


# ----------------------------------------------------------------------------
# Pallas kernel: fused block-diagonal complex 2-layer MLP + ReLU + softshrink
# Data layout: x tile is (2C, T)  [rows 0..C-1 = real, C..2C-1 = imag],
# weights are pre-packed real matrices implementing the complex product.
# ----------------------------------------------------------------------------
def _afno_mlp_kernel(x_ref, a1_ref, b1_ref, a2_ref, b2_ref, o_ref):
    x = x_ref[...]                                    # (2C, T)

    # layer 1: complex matmul fused into one real matmul, + bias, ReLU
    o1 = jnp.maximum(
        jnp.dot(a1_ref[...], x, preferred_element_type=jnp.float32)
        + b1_ref[...], 0.0)                           # (2C*hf, T)

    # layer 2: complex matmul fused into one real matmul, + bias
    o2 = (jnp.dot(a2_ref[...], o1, preferred_element_type=jnp.float32)
          + b2_ref[...])                              # (2C, T)

    # softshrink (F.softshrink, lambd = sparsity_threshold)
    lam = jnp.float32(SPARSITY_THRESHOLD)
    o_ref[...] = jnp.where(o2 > lam, o2 - lam,
                           jnp.where(o2 < -lam, o2 + lam, 0.0))


def _spectral_mlp(xcat, a1, b1c, a2, b2c):
    """xcat: (B, 2C, N) f32 -> (B, 2C, N) f32 via the Pallas kernel."""
    bb, twoc, n = xcat.shape
    chf2 = a1.shape[0]

    # Lane tile: multiple of 128 when tiling, or the full token extent when
    # everything fits in one tile (satisfies the (8,128) rule either way and
    # avoids any padding pass in HBM).
    t = n if n <= TOKEN_TILE else TOKEN_TILE
    grid = (bb, pl.cdiv(n, t))

    x_spec = pl.BlockSpec((None, twoc, t), lambda b, i: (b, 0, i))
    a1_spec = pl.BlockSpec((chf2, twoc), lambda b, i: (0, 0))
    b1_spec = pl.BlockSpec((chf2, 1), lambda b, i: (0, 0))
    a2_spec = pl.BlockSpec((twoc, chf2), lambda b, i: (0, 0))
    b2_spec = pl.BlockSpec((twoc, 1), lambda b, i: (0, 0))
    out_spec = pl.BlockSpec((None, twoc, t), lambda b, i: (b, 0, i))

    return pl.pallas_call(
        _afno_mlp_kernel,
        out_shape=jax.ShapeDtypeStruct((bb, twoc, n), jnp.float32),
        grid_spec=pltpu.PrefetchScalarGridSpec(
            num_scalar_prefetch=0,
            grid=grid,
            in_specs=[x_spec, a1_spec, b1_spec, a2_spec, b2_spec],
            out_specs=out_spec,
        ),
        compiler_params=pltpu.CompilerParams(
            dimension_semantics=("parallel", "parallel")),
    )(xcat, a1, b1c, a2, b2c)


# ----------------------------------------------------------------------------
# Parameter construction (deterministic, matches shapes of AFNO2D.__init__)
# ----------------------------------------------------------------------------
def init_params(key):
    k1, k2, k3, k4 = jax.random.split(key, 4)
    nb, bs, hf = NUM_BLOCKS, BLOCK_SIZE, HIDDEN_SIZE_FACTOR
    w1 = SCALE * jax.random.normal(k1, (2, nb, bs, bs * hf), jnp.float32)
    b1 = SCALE * jax.random.normal(k2, (2, nb, bs * hf), jnp.float32)
    w2 = SCALE * jax.random.normal(k3, (2, nb, bs * hf, bs), jnp.float32)
    b2 = SCALE * jax.random.normal(k4, (2, nb, bs), jnp.float32)
    return w1, b1, w2, b2


def _block_diag_T(w):
    """(nb, din, dout) per-block weights -> dense block-diagonal TRANSPOSED
    matrix (nb*dout, nb*din) so the kernel can do W @ x_col directly.
    TODO(synk): at production C (256-768) keep the per-block structure and
    contract per block instead of densifying (8x fewer MXU FLOPs)."""
    nb, din, dout = w.shape
    out = jnp.zeros((nb * dout, nb * din), dtype=w.dtype)
    for b in range(nb):
        out = out.at[b * dout:(b + 1) * dout, b * din:(b + 1) * din].set(w[b].T)
    return out


def pack_params(w1, b1, w2, b2):
    """Pack the per-block complex-MLP weights into fused real matrices:
        A = [[Wr^T, -Wi^T],
             [Wi^T,  Wr^T]]
    so that A @ [xr; xi] = [Re(W x); Im(W x)] (exact same math)."""
    w1rT = _block_diag_T(w1[0])                 # (C*hf, C)
    w1iT = _block_diag_T(w1[1])
    a1 = jnp.concatenate(
        [jnp.concatenate([w1rT, -w1iT], axis=1),
         jnp.concatenate([w1iT, w1rT], axis=1)], axis=0)        # (2C*hf, 2C)
    b1c = jnp.concatenate([b1[0].reshape(-1),
                           b1[1].reshape(-1)])[:, None]          # (2C*hf, 1)

    w2rT = _block_diag_T(w2[0])                 # (C, C*hf)
    w2iT = _block_diag_T(w2[1])
    a2 = jnp.concatenate(
        [jnp.concatenate([w2rT, -w2iT], axis=1),
         jnp.concatenate([w2iT, w2rT], axis=1)], axis=0)        # (2C, 2C*hf)
    b2c = jnp.concatenate([b2[0].reshape(-1),
                           b2[1].reshape(-1)])[:, None]          # (2C, 1)
    return a1, b1c, a2, b2c


# ----------------------------------------------------------------------------
# Full AFNO2D forward (channel_first=True, hard_thresholding_fraction=1)
# ----------------------------------------------------------------------------
@jax.jit
def afno2d_forward(x, a1, b1c, a2, b2c):
    # x: (B, C, H, W)  -- NCHW, channel_first=True
    bias = x
    in_dtype = x.dtype
    B, C, H, W = x.shape

    # TODO(synk): FFT has no Pallas TPU primitive; rfftn/irfftn stay in XLA.
    # FFT over axes (2,3) of the NCHW tensor is mathematically identical to
    # the module's permute -> rfftn over (1,2) and avoids both NCHW<->NHWC
    # transposes.
    xk = jnp.fft.rfftn(x.astype(jnp.float32), axes=(2, 3), norm="ortho")
    Wf = W // 2 + 1
    n = H * Wf

    # hard_thresholding_fraction == 1 -> kept_modes == total_modes, so the
    # PyTorch slices cover the full tensor and the spectral MLP applies
    # everywhere.  Stack [real; imag] along the channel axis: (B, 2C, N).
    xcat = jnp.concatenate([jnp.real(xk).reshape(B, C, n),
                            jnp.imag(xk).reshape(B, C, n)], axis=1)

    o = _spectral_mlp(xcat, a1, b1c, a2, b2c)        # (B, 2C, N)

    o_r = o[:, :C, :].reshape(B, C, H, Wf)
    o_i = o[:, C:, :].reshape(B, C, H, Wf)
    xk_out = jax.lax.complex(o_r, o_i)

    y = jnp.fft.irfftn(xk_out, s=(H * RES_MULT, W * RES_MULT),
                       axes=(2, 3), norm="ortho")    # (B, C, H, W)
    y = y.astype(in_dtype)
    if RES_MULT > 1:
        return y
    return y + bias


# ----------------------------------------------------------------------------
# Pure-JAX reference (mirrors the PyTorch module exactly) for correctness
# ----------------------------------------------------------------------------
def _reference_forward(x, w1, b1, w2, b2):
    bias = x
    in_dtype = x.dtype
    B, C, H, W = x.shape
    xf = jnp.transpose(x, (0, 2, 3, 1)).astype(jnp.float32)
    xk = jnp.fft.rfftn(xf, axes=(1, 2), norm="ortho")
    Wf = W // 2 + 1
    xk = xk.reshape(B, H, Wf, NUM_BLOCKS, BLOCK_SIZE)
    xr, xi = jnp.real(xk), jnp.imag(xk)
    o1r = jax.nn.relu(jnp.einsum("...bi,bio->...bo", xr, w1[0])
                      - jnp.einsum("...bi,bio->...bo", xi, w1[1]) + b1[0])
    o1i = jax.nn.relu(jnp.einsum("...bi,bio->...bo", xi, w1[0])
                      + jnp.einsum("...bi,bio->...bo", xr, w1[1]) + b1[1])
    o2r = (jnp.einsum("...bi,bio->...bo", o1r, w2[0])
           - jnp.einsum("...bi,bio->...bo", o1i, w2[1]) + b2[0])
    o2i = (jnp.einsum("...bi,bio->...bo", o1i, w2[0])
           + jnp.einsum("...bi,bio->...bo", o1r, w2[1]) + b2[1])
    lam = SPARSITY_THRESHOLD

    def shrink(v):
        return jnp.where(v > lam, v - lam, jnp.where(v < -lam, v + lam, 0.0))

    xk_out = (shrink(o2r) + 1j * shrink(o2i)).reshape(B, H, Wf, C)
    y = jnp.fft.irfftn(xk_out, s=(H, W), axes=(1, 2), norm="ortho")
    y = jnp.transpose(y.astype(in_dtype), (0, 3, 1, 2))
    return y + bias


if __name__ == "__main__":
    key = jax.random.PRNGKey(0)
    kp, kx = jax.random.split(key)

    w1, b1, w2, b2 = init_params(kp)
    packed = pack_params(w1, b1, w2, b2)

    # small NCHW input consistent with the module: B=2, C=hidden_size=32, H=W=16
    x = jax.random.normal(kx, (2, HIDDEN_SIZE, 16, 16), jnp.float32)

    out = afno2d_forward(x, *packed)
    out = jax.block_until_ready(out)

    ref = jax.block_until_ready(_reference_forward(x, w1, b1, w2, b2))
    assert out.shape == x.shape and out.dtype == x.dtype
    assert float(jnp.max(jnp.abs(out - ref))) < 1e-4, "mismatch vs reference"

    print("KERNEL_OK")
</pallas_src>

<mosaic_0001>
module attributes {stable_mosaic.version = 11 : i64} {
  func.func @_afno_mlp_kernel(%arg0: i32, %arg1: i32, %arg2: memref<1x64x144xf32, #tpu.memory_space<vmem>>, %arg3: memref<64x64xf32, #tpu.memory_space<vmem>>, %arg4: memref<64x1xf32, #tpu.memory_space<vmem>>, %arg5: memref<64x64xf32, #tpu.memory_space<vmem>>, %arg6: memref<64x1xf32, #tpu.memory_space<vmem>>, %arg7: memref<1x64x144xf32, #tpu.memory_space<vmem>>) attributes {dimension_semantics = [#tpu.dimension_semantics<parallel>, #tpu.dimension_semantics<parallel>], iteration_bounds = array<i64: 2, 1>, scalar_prefetch = 0 : i64, scratch_operands = 0 : i64, tpu.core_type = #tpu.core_type<tc>, window_params = [{transform_indices = @transform_0, window_bounds = array<i64: 1, 64, 144>}, {pipeline_mode = #tpu.pipeline_mode<synchronous>, transform_indices = @transform_1, window_bounds = array<i64: 64, 64>}, {pipeline_mode = #tpu.pipeline_mode<synchronous>, transform_indices = @transform_2, window_bounds = array<i64: 64, 1>}, {pipeline_mode = #tpu.pipeline_mode<synchronous>, transform_indices = @transform_3, window_bounds = array<i64: 64, 64>}, {pipeline_mode = #tpu.pipeline_mode<synchronous>, transform_indices = @transform_4, window_bounds = array<i64: 64, 1>}, {transform_indices = @transform_5, window_bounds = array<i64: 1, 64, 144>}]} {
    %c0 = arith.constant 0 : index
    %c0_0 = arith.constant 0 : index
    %c0_1 = arith.constant 0 : index
    %0 = vector.load %arg2[%c0, %c0_0, %c0_1] : memref<1x64x144xf32, #tpu.memory_space<vmem>>, vector<1x64x144xf32>
    %1 = vector.shape_cast %0 : vector<1x64x144xf32> to vector<64x144xf32>
    %c0_2 = arith.constant 0 : index
    %c0_3 = arith.constant 0 : index
    %2 = vector.load %arg3[%c0_2, %c0_3] : memref<64x64xf32, #tpu.memory_space<vmem>>, vector<64x64xf32>
    %cst = arith.constant dense<0.000000e+00> : vector<64x144xf32>
    %3 = tpu.matmul %2, %1, %cst {dimension_numbers = #tpu.dot_dimension_numbers<[1], [0], [0], [1], [0, 0, 1, 1], [], []>} : vector<64x64xf32>, vector<64x144xf32>, vector<64x144xf32> -> vector<64x144xf32>
    %c0_4 = arith.constant 0 : index
    %c0_5 = arith.constant 0 : index
    %4 = vector.load %arg4[%c0_4, %c0_5] : memref<64x1xf32, #tpu.memory_space<vmem>>, vector<64x1xf32>
    %5 = vector.broadcast %4 : vector<64x1xf32> to vector<64x144xf32>
    %6 = arith.addf %3, %5 : vector<64x144xf32>
    %cst_6 = arith.constant 0.000000e+00 : f32
    %7 = vector.broadcast %cst_6 : f32 to vector<64x144xf32>
    %8 = arith.maximumf %6, %7 : vector<64x144xf32>
    %c0_7 = arith.constant 0 : index
    %c0_8 = arith.constant 0 : index
    %9 = vector.load %arg5[%c0_7, %c0_8] : memref<64x64xf32, #tpu.memory_space<vmem>>, vector<64x64xf32>
    %cst_9 = arith.constant dense<0.000000e+00> : vector<64x144xf32>
    %10 = tpu.matmul %9, %8, %cst_9 {dimension_numbers = #tpu.dot_dimension_numbers<[1], [0], [0], [1], [0, 0, 1, 1], [], []>} : vector<64x64xf32>, vector<64x144xf32>, vector<64x144xf32> -> vector<64x144xf32>
    %c0_10 = arith.constant 0 : index
    %c0_11 = arith.constant 0 : index
    %11 = vector.load %arg6[%c0_10, %c0_11] : memref<64x1xf32, #tpu.memory_space<vmem>>, vector<64x1xf32>
    %12 = vector.broadcast %11 : vector<64x1xf32> to vector<64x144xf32>
    %13 = arith.addf %10, %12 : vector<64x144xf32>
    %cst_12 = arith.constant 0.00999999977 : f32
    %14 = vector.broadcast %cst_12 : f32 to vector<64x144xf32>
    %15 = arith.cmpf ogt, %13, %14 : vector<64x144xf32>
    %cst_13 = arith.constant 0.00999999977 : f32
    %16 = vector.broadcast %cst_13 : f32 to vector<64x144xf32>
    %17 = arith.subf %13, %16 : vector<64x144xf32>
    %cst_14 = arith.constant 0.000000e+00 : f32
    %cst_15 = arith.constant 0.00999999977 : f32
    %18 = arith.subf %cst_14, %cst_15 : f32
    %19 = vector.broadcast %18 : f32 to vector<64x144xf32>
    %20 = arith.cmpf olt, %13, %19 : vector<64x144xf32>
    %cst_16 = arith.constant 0.00999999977 : f32
    %21 = vector.broadcast %cst_16 : f32 to vector<64x144xf32>
    %22 = arith.addf %13, %21 : vector<64x144xf32>
    %cst_17 = arith.constant 0.000000e+00 : f32
    %23 = vector.broadcast %cst_17 : f32 to vector<64x144xf32>
    %24 = arith.select %20, %22, %23 : vector<64x144xi1>, vector<64x144xf32>
    %25 = arith.select %15, %17, %24 : vector<64x144xi1>, vector<64x144xf32>
    %c0_18 = arith.constant 0 : index
    %c0_19 = arith.constant 0 : index
    %c0_20 = arith.constant 0 : index
    %26 = vector.load %arg7[%c0_18, %c0_19, %c0_20] : memref<1x64x144xf32, #tpu.memory_space<vmem>>, vector<1x64x144xf32>
    %27 = vector.shape_cast %26 : vector<1x64x144xf32> to vector<64x144xf32>
    %28 = vector.shape_cast %25 : vector<64x144xf32> to vector<1x64x144xf32>
    tpu.vector_store %arg7[%c0_18, %c0_19, %c0_20], %28 {strides = array<i32>} : memref<1x64x144xf32, #tpu.memory_space<vmem>>, vector<1x64x144xf32>,
    return
  }
  func.func @transform_0(%arg0: i32, %arg1: i32) -> (i32, i32, i32) {
    %c0_i32 = arith.constant 0 : i32
    %c0_i32_0 = arith.constant 0 : i32
    return %arg0, %c0_i32, %arg1 : i32, i32, i32
  }
  func.func @transform_1(%arg0: i32, %arg1: i32) -> (i32, i32) {
    %c0_i32 = arith.constant 0 : i32
    %c0_i32_0 = arith.constant 0 : i32
    %c0_i32_1 = arith.constant 0 : i32
    return %c0_i32, %c0_i32_0 : i32, i32
  }
  func.func @transform_2(%arg0: i32, %arg1: i32) -> (i32, i32) {
    %c0_i32 = arith.constant 0 : i32
    %c0_i32_0 = arith.constant 0 : i32
    %c0_i32_1 = arith.constant 0 : i32
    return %c0_i32, %c0_i32_0 : i32, i32
  }
  func.func @transform_3(%arg0: i32, %arg1: i32) -> (i32, i32) {
    %c0_i32 = arith.constant 0 : i32
    %c0_i32_0 = arith.constant 0 : i32
    %c0_i32_1 = arith.constant 0 : i32
    return %c0_i32, %c0_i32_0 : i32, i32
  }
  func.func @transform_4(%arg0: i32, %arg1: i32) -> (i32, i32) {
    %c0_i32 = arith.constant 0 : i32
    %c0_i32_0 = arith.constant 0 : i32
    %c0_i32_1 = arith.constant 0 : i32
    return %c0_i32, %c0_i32_0 : i32, i32
  }
  func.func @transform_5(%arg0: i32, %arg1: i32) -> (i32, i32, i32) {
    %c0_i32 = arith.constant 0 : i32
    %c0_i32_0 = arith.constant 0 : i32
    return %arg0, %c0_i32, %arg1 : i32, i32, i32
  }
}

</mosaic_0001>

<bundles_post_ra>
// kernel: reverse.1
= control target key start
LH: loop header
LB: loop body
LE: loop exit
PB: predicated region body
PF: predicated region fallthrough
CT: control target
= control target key end

     0   :  { %s344_s0 = inlined_call_operand.vmem [shape: f32[2,32,16,7], index: 0, kind: input, shape index: {}]   ;;  %s345_s1 = inlined_call_operand.vmem [shape: f32[2,32,16,7], index: 1, kind: output, shape index: {}]  }
   0x1   :  { %v112_v0 = vld [vmem:[%s344_s0 + $0x60] sm:$0xff]  ;;  %v113_v1 = vld [vmem:[%s344_s0 + $0xd0] sm:$0xff]  ;;  %v138_v14 = vld [vmem:[%s344_s0 + $0x68] sm:$0xff] }
   0x2   :  { %v115_v2 = vld [vmem:[%s344_s0 + $0x50] sm:$0xff]  ;;  %4 = vst [vmem:[%s345_s1] sm:$0xff] %v112_v0  ;;  %114 = vst [vmem:[%s345_s1 + $0x70] sm:$0xff] %v113_v1  ;;  %v117_v3 = vld [vmem:[%s344_s0 + $0xc0] sm:$0xff] }
   0x3   :  { %116 = vst [vmem:[%s345_s1 + $0x10] sm:$0xff] %v115_v2  ;;  %v119_v4 = vld [vmem:[%s344_s0 + $0x40] sm:$0xff]  ;;  %v121_v5 = vld [vmem:[%s344_s0 + $0xb0] sm:$0xff]  ;;  %118 = vst [vmem:[%s345_s1 + $0x80] sm:$0xff] %v117_v3 }
   0x4   :  { %120 = vst [vmem:[%s345_s1 + $0x20] sm:$0xff] %v119_v4  ;;  %122 = vst [vmem:[%s345_s1 + $0x90] sm:$0xff] %v121_v5  ;;  %v123_v6 = vld [vmem:[%s344_s0 + $0x30] sm:$0xff]  ;;  %v125_v7 = vld [vmem:[%s344_s0 + $0xa0] sm:$0xff] }
   0x5   :  { %v127_v8 = vld [vmem:[%s344_s0 + $0x20] sm:$0xff]  ;;  %124 = vst [vmem:[%s345_s1 + $0x30] sm:$0xff] %v123_v6  ;;  %126 = vst [vmem:[%s345_s1 + $0xa0] sm:$0xff] %v125_v7  ;;  %v129_v9 = vld [vmem:[%s344_s0 + $0x90] sm:$0xff] }
   0x6   :  { %128 = vst [vmem:[%s345_s1 + $0x40] sm:$0xff] %v127_v8  ;;  %v131_v10 = vld [vmem:[%s344_s0 + $0x10] sm:$0xff]  ;;  %v133_v11 = vld [vmem:[%s344_s0 + $0x80] sm:$0xff]  ;;  %130 = vst [vmem:[%s345_s1 + $0xb0] sm:$0xff] %v129_v9 }
   0x7   :  { %132 = vst [vmem:[%s345_s1 + $0x50] sm:$0xff] %v131_v10  ;;  %134 = vst [vmem:[%s345_s1 + $0xc0] sm:$0xff] %v133_v11  ;;  %v49_v12 = vld [vmem:[%s344_s0] sm:$0xff]  ;;  %v136_v13 = vld [vmem:[%s344_s0 + $0x70] sm:$0xff] }
   0x8   :  { %135 = vst [vmem:[%s345_s1 + $0x60] sm:$0xff] %v49_v12  ;;  %137 = vst [vmem:[%s345_s1 + $0xd0] sm:$0xff] %v136_v13  ;;  %v140_v15 = vld [vmem:[%s344_s0 + $0xd8] sm:$0xff]  ;;  %v144_v17 = vld [vmem:[%s344_s0 + $0xc8] sm:$0xff] }
   0x9   :  { %139 = vst [vmem:[%s345_s1 + $0x8] sm:$0xff] %v138_v14  ;;  %v142_v16 = vld [vmem:[%s344_s0 + $0x58] sm:$0xff]  ;;  %141 = vst [vmem:[%s345_s1 + $0x78] sm:$0xff] %v140_v15  ;;  %v146_v18 = vld [vmem:[%s344_s0 + $0x48] sm:$0xff] }
   0xa   :  { %143 = vst [vmem:[%s345_s1 + $0x18] sm:$0xff] %v142_v16  ;;  %145 = vst [vmem:[%s345_s1 + $0x88] sm:$0xff] %v144_v17  ;;  %v148_v19 = vld [vmem:[%s344_s0 + $0xb8] sm:$0xff]  ;;  %v152_v21 = vld [vmem:[%s344_s0 + $0xa8] sm:$0xff] }
   0xb   :  { %v150_v20 = vld [vmem:[%s344_s0 + $0x38] sm:$0xff]  ;;  %147 = vst [vmem:[%s345_s1 + $0x28] sm:$0xff] %v146_v18  ;;  %149 = vst [vmem:[%s345_s1 + $0x98] sm:$0xff] %v148_v19  ;;  %v154_v22 = vld [vmem:[%s344_s0 + $0x28] sm:$0xff] }
   0xc   :  { %151 = vst [vmem:[%s345_s1 + $0x38] sm:$0xff] %v150_v20  ;;  %v156_v23 = vld [vmem:[%s344_s0 + $0x98] sm:$0xff]  ;;  %153 = vst [vmem:[%s345_s1 + $0xa8] sm:$0xff] %v152_v21  ;;  %v160_v25 = vld [vmem:[%s344_s0 + $0x88] sm:$0xff] }
   0xd   :  { %155 = vst [vmem:[%s345_s1 + $0x48] sm:$0xff] %v154_v22  ;;  %157 = vst [vmem:[%s345_s1 + $0xb8] sm:$0xff] %v156_v23  ;;  %v158_v24 = vld [vmem:[%s344_s0 + $0x18] sm:$0xff]  ;;  %v162_v26 = vld [vmem:[%s344_s0 + $0x8] sm:$0xff] }
   0xe   :  { %159 = vst [vmem:[%s345_s1 + $0x58] sm:$0xff] %v158_v24  ;;  %161 = vst [vmem:[%s345_s1 + $0xc8] sm:$0xff] %v160_v25  ;;  %v164_v27 = vld [vmem:[%s344_s0 + $0x78] sm:$0xff] }
   0xf   :  { %163 = vst [vmem:[%s345_s1 + $0x68] sm:$0xff] %v162_v26  ;;  %165 = vst [vmem:[%s345_s1 + $0xd8] sm:$0xff] %v164_v27 }

// kernel: afno2d_forward.1
= control target key start
LH: loop header
LB: loop body
LE: loop exit
PB: predicated region body
PF: predicated region fallthrough
CT: control target
= control target key end

     0   :  { %s1012_s18 = smov 0   ;;  %s1014_s19 = smov 0   ;;  %s1224_s0 = inlined_call_operand.vmem [shape: f32[2,64,144], index: 0, kind: input, shape index: {}]   ;;  %s1225_s1 = inlined_call_operand.vmem [shape: f32[64,64], index: 1, kind: input, shape index: {}]   ;;  %s1226_s2 = inlined_call_operand.vmem [shape: f32[64,1], index: 2, kind: input, shape index: {}]   ;;  %s1227_s3 = inlined_call_operand.vmem [shape: f32[64,64], index: 3, kind: input, shape index: {}]   ;;  %s1228_s4 = inlined_call_operand.vmem [shape: f32[64,1], index: 4, kind: input, shape index: {}]   ;;  %s1229_s5 = inlined_call_operand.vmem [shape: f32[2,64,144], index: 5, kind: output, shape index: {}]  }
   0x1   :  { %s1016_s20 = smov 0  }
   0x2 LB: > { %s27_s21 = sadd.s32 1, %s974_s19  ;;  %p887_p0 = scmp.ge.s32.totalorder %s978_s20, 1  ;;  %s978_s20 = sphi %s1016_s20, %s15_s20   ;;  %s974_s19 = sphi %s1014_s19, %s1231_s19   ;;  %s970_s18 = sphi %s1012_s18, %s1230_s18  }
   0x3   : > { %p29_p1 = scmp.ge.s32.totalorder %s27_s21, 2  ;;  %p208_p2 = scmp.lt.s32.totalorder %s978_s20, 3 }
   0x5   : > { %s1233_s21 = smov (%p29_p1, %s27_s21), 0  ;;  %p209_p3 = pnand %p887_p0, %p208_p2 }
   0x6   : > { %p245_p4 = scmp.lt.s32.totalorder (!%p209_p3), %s970_s18, 1 }
   0x7   : > { %212 = sbr.rel (%p209_p3) target bundleno = 508 (0x1fc), region = 40 }
   0xc   : > { %v980_v0 = vmov 0.0   ;;  %s1235_s18 = smov (!%p245_p4, %s970_s18), 1  ;;  %v981_v1 = vmov 0   ;;  %v293_v2 = vld [vmem:[%s1226_s2 + $0x28] sm:$0xff]  ;;  %v295_v3 = vld [vmem:[%s1226_s2 + $0x38] sm:$0xff]  ;;  %v292_v4 = vld [vmem:[%s1226_s2 + $0x20] sm:$0xff] }
   0xd   : > { %425 = vmatprep.mubr.f32.mxu0 %v980_v0  ;;  %634 = vmatprep.mubr.f32.mxu1 %v980_v0  ;;  %s926_s26 = sshll.u32 %s1235_s18, 7  ;;  %v294_v5 = vld [vmem:[%s1226_s2 + $0x30] sm:$0xff]  ;;  %v291_v13 = vld [vmem:[%s1226_s2 + $0x18] sm:$0xff]  ;;  %v288_v17 = vld [vmem:[%s1226_s2] sm:$0xff]  ;;  %vm336_vm0 = vcmask 523264   ;;  %vm780_vm4 = vcmask 130048  }
   0xe   : > { %955 = vset.pattern.permute.xlu1 %v981_v1  ;;  %954 = vset.pattern.permute.xlu0 %v981_v1  ;;  %s1049_s6 = scalar_lea.vmem %s1224_s0, %s926_s26  ;;  %v290_v11 = vld [vmem:[%s1226_s2 + $0x10] sm:$0xff]  ;;  %v289_v19 = vld [vmem:[%s1226_s2 + $0x8] sm:$0xff]  ;;  %v498_v25 = vld [vmem:[%s1228_s4] sm:$0xff] }
   0xf   : > { %323 = vperm.xlu1 %955, %v293_v2   ;;  %333 = vperm.xlu0 %954, %v295_v3   ;;  %v279_v6 = vld [vmem:[%s1049_s6 + $0x78] sm:$0xff]  ;;  %v278_v7 = vld [vmem:[%s1049_s6 + $0x70] sm:$0xff]  ;;  %v277_v8 = vld [vmem:[%s1049_s6 + $0x68] sm:$0xff] }
  0x10   : > { %377 = vmatprep.subr.mxu0 %v279_v6  ;;  %v276_v9 = vld [vmem:[%s1049_s6 + $0x60] sm:$0xff]  ;;  %v275_v10 = vld [vmem:[%s1049_s6 + $0x58] sm:$0xff]  ;;  %v274_v12 = vld [vmem:[%s1049_s6 + $0x50] sm:$0xff] }
  0x11   : > { %378 = vmatpush1.msra.mxu0 %v278_v7  ;;  %v273_v14 = vld [vmem:[%s1049_s6 + $0x48] sm:$0xff]  ;;  %v272_v15 = vld [vmem:[%s1049_s6 + $0x40] sm:$0xff]  ;;  %v271_v16 = vld [vmem:[%s1049_s6 + $0x38] sm:$0xff] }
  0x12   : > { %379 = vmatprep.subr.mxu0 %v277_v8  ;;  %v270_v18 = vld [vmem:[%s1049_s6 + $0x30] sm:$0xff]  ;;  %v269_v20 = vld [vmem:[%s1049_s6 + $0x28] sm:$0xff]  ;;  %v268_v21 = vld [vmem:[%s1049_s6 + $0x20] sm:$0xff] }
  0x13   : > { %318 = vperm.xlu1 %955, %v292_v4   ;;  %328 = vperm.xlu0 %954, %v294_v5   ;;  %v267_v22 = vld [vmem:[%s1049_s6 + $0x18] sm:$0xff]  ;;  %v499_v23 = vld [vmem:[%s1228_s4 + $0x8] sm:$0xff]  ;;  %v266_v24 = vld [vmem:[%s1049_s6 + $0x10] sm:$0xff] }
  0x14   : > { %380 = vmatpush1.msra.mxu0 %v276_v9  ;;  %v265_v26 = vld [vmem:[%s1049_s6 + $0x8] sm:$0xff]  ;;  %v264_v27 = vld [vmem:[%s1049_s6] sm:$0xff]  ;;  %v501_v29 = vld [vmem:[%s1228_s4 + $0x18] sm:$0xff]  ;;  %s1189_s6 = scalar_lea.vmem %s1229_s5, %s926_s26 }
  0x15   : > { %381 = vmatprep.subr.mxu0 %v275_v10  ;;  %v280_v28 = vld [vmem:[%s1225_s1] sm:$0xff]  ;;  %v500_v30 = vld [vmem:[%s1228_s4 + $0x10] sm:$0xff]  ;;  %v281_v31 = vld [vmem:[%s1225_s1 + $0x8] sm:$0xff] }
  0x16   : > { %382 = vmatpush1.msra.mxu0 %v274_v12  ;;  %v503_v32 = vld [vmem:[%s1228_s4 + $0x28] sm:$0xff]  ;;  %v502_v33 = vld [vmem:[%s1228_s4 + $0x20] sm:$0xff]  ;;  %v282_v34 = vld [vmem:[%s1225_s1 + $0x10] sm:$0xff] }
  0x17   : > { %308 = vperm.xlu1 %955, %v290_v11   ;;  %313 = vperm.xlu0 %954, %v291_v13   ;;  %v505_v35 = vld [vmem:[%s1228_s4 + $0x38] sm:$0xff]  ;;  %v504_v36 = vld [vmem:[%s1228_s4 + $0x30] sm:$0xff]  ;;  %v284_v38 = vld [vmem:[%s1225_s1 + $0x20] sm:$0xff] }
  0x18   : > { %383 = vmatprep.subr.mxu0 %v273_v14  ;;  %v283_v37 = vld [vmem:[%s1225_s1 + $0x18] sm:$0xff]  ;;  %v285_v39 = vld [vmem:[%s1225_s1 + $0x28] sm:$0xff]  ;;  %v286_v40 = vld [vmem:[%s1225_s1 + $0x30] sm:$0xff] }
  0x19   : > { %384 = vmatpush1.msra.mxu0 %v272_v15  ;;  %v287_v41 = vld [vmem:[%s1225_s1 + $0x38] sm:$0xff] }
  0x1a   : > { %385 = vmatprep.subr.mxu0 %v271_v16 }
  0x1b   : > { %298 = vperm.xlu1 %955, %v288_v17   ;;  %386 = vmatpush1.msra.mxu0 %v270_v18 }
  0x1c   : > { %303 = vperm.xlu0 %954, %v289_v19   ;;  %387 = vmatprep.subr.mxu0 %v269_v20 }
  0x1d   : > { %388 = vmatpush1.msra.mxu0 %v268_v21 }
  0x1e   : > { %389 = vmatprep.subr.mxu0 %v267_v22 }
  0x1f   : > { %513 = vperm.xlu1 %955, %v499_v23   ;;  %390 = vmatpush1.msra.mxu0 %v266_v24 }
  0x20   : > { %508 = vperm.xlu0 %954, %v498_v25   ;;  %391 = vmatprep.subr.mxu0 %v265_v26 }
  0x21   : > { %392 = vmatpush1.msra.mxu0 %v264_v27 }
  0x22   : > { %892 = vmatmul.mubr.msk.f32.vlgmr.msra.gmra.mxu0 %vm336_vm0, %v280_v28 }
  0x23   : > { %523 = vperm.xlu1 %955, %v501_v29   ;;  %431 = vmatprep.mubr.f32.mxu0 %v980_v0 }
  0x24   : > { %518 = vperm.xlu0 %954, %v500_v30  }
  0x26   : > { %893 = vmatmul.mubr.msk.f32.gmra.mxu0 %vm336_vm0, %v281_v31 }
  0x27   : > { %533 = vperm.xlu1 %955, %v503_v32   ;;  %437 = vmatprep.mubr.f32.mxu0 %v980_v0 }
  0x28   : > { %528 = vperm.xlu0 %954, %v502_v33  }
  0x2a   : > { %894 = vmatmul.mubr.msk.f32.gmra.mxu0 %vm336_vm0, %v282_v34 }
  0x2b   : > { %543 = vperm.xlu1 %955, %v505_v35   ;;  %443 = vmatprep.mubr.f32.mxu0 %v980_v0  ;;  %v490_v35 = vld [vmem:[%s1227_s3] sm:$0xff] }
  0x2c   : > { %538 = vperm.xlu0 %954, %v504_v36   ;;  %v491_v36 = vld [vmem:[%s1227_s3 + $0x8] sm:$0xff] }
  0x2e   : > { %895 = vmatmul.mubr.msk.f32.gmra.mxu0 %vm336_vm0, %v283_v37  ;;  %v492_v37 = vld [vmem:[%s1227_s3 + $0x10] sm:$0xff] }
  0x2f   : > { %449 = vmatprep.mubr.f32.mxu0 %v980_v0 }
  0x32   : > { %896 = vmatmul.mubr.msk.f32.gmra.mxu0 %vm336_vm0, %v284_v38  ;;  %v493_v38 = vld [vmem:[%s1227_s3 + $0x18] sm:$0xff] }
  0x33   : > { %455 = vmatprep.mubr.f32.mxu0 %v980_v0 }
  0x36   : > { %897 = vmatmul.mubr.msk.f32.gmra.mxu0 %vm336_vm0, %v285_v39  ;;  %v494_v39 = vld [vmem:[%s1227_s3 + $0x20] sm:$0xff] }
  0x37   : > { %461 = vmatprep.mubr.f32.mxu0 %v980_v0 }
  0x3a   : > { %898 = vmatmul.mubr.msk.f32.gmra.mxu0 %vm336_vm0, %v286_v40  ;;  %v495_v40 = vld [vmem:[%s1227_s3 + $0x28] sm:$0xff] }
  0x3b   : > { %467 = vmatprep.mubr.f32.mxu0 %v980_v0 }
  0x3e   : > { %899 = vmatmul.mubr.msk.f32.gmra.mxu0 %vm336_vm0, %v287_v41  ;;  %v496_v41 = vld [vmem:[%s1227_s3 + $0x30] sm:$0xff] }
  0x8a   : > { %v334_v53 = vpop.permute.xlu0 %333  ;;  %v324_v55 = vpop.permute.xlu1 %323 }
  0x8e   : > { %v329_v58 = vpop.permute.xlu0 %328  ;;  %v319_v60 = vpop.permute.xlu1 %318 }
  0x92   : > { %v314_v3 = vpop.permute.xlu0 %313  ;;  %v309_v8 = vpop.permute.xlu1 %308 }
  0x96   : > { %v299_v22 = vpop.permute.xlu1 %298 }
  0x97   : > { %v304_v17 = vpop.permute.xlu0 %303 }
  0xe2   : > { %v427_v42 = vpop.f32.mrf.mxu0 }
  0xe3   : > { %v428_v29 = vadd.f32 %v427_v42, %v299_v22  ;;  %v497_v42 = vld [vmem:[%s1227_s3 + $0x38] sm:$0xff] }
  0xe4   : > { %v429_v43 = vpop.f32.mrf.mxu0 }
  0xe5   : > { %v430_v27 = vadd.f32 %v429_v43, %v299_v22  ;;  %v474_v34 = vmax.f32 %v428_v29, 0.0  ;;  %v509_v43 = vpop.permute.xlu0 %508 }
  0xe6   : > { %v433_v44 = vpop.f32.mrf.mxu0 }
  0xe7   : > { %v434_v25 = vadd.f32 %v433_v44, %v304_v17  ;;  %v475_v33 = vmax.f32 %v430_v27, 0.0 }
  0xe8   : > { %v435_v45 = vpop.f32.mrf.mxu0 }
  0xe9   : > { %v436_v23 = vadd.f32 %v435_v45, %v304_v17  ;;  %v476_v32 = vmax.f32 %v434_v25, 0.0 }
  0xea   : > { %v439_v46 = vpop.f32.mrf.mxu0 }
  0xeb   : > { %v440_v20 = vadd.f32 %v439_v46, %v309_v8  ;;  %v477_v31 = vmax.f32 %v436_v23, 0.0 }
  0xec   : > { %v441_v47 = vpop.f32.mrf.mxu0 }
  0xed   : > { %v442_v18 = vadd.f32 %v441_v47, %v309_v8  ;;  %v478_v30 = vmax.f32 %v440_v20, 0.0 }
  0xee   : > { %v445_v48 = vpop.f32.mrf.mxu0 }
  0xef   : > { %v446_v15 = vadd.f32 %v445_v48, %v314_v3  ;;  %v479_v28 = vmax.f32 %v442_v18, 0.0 }
  0xf0   : > { %v447_v49 = vpop.f32.mrf.mxu0 }
  0xf1   : > { %v448_v13 = vadd.f32 %v447_v49, %v314_v3  ;;  %v480_v26 = vmax.f32 %v446_v15, 0.0  ;;  %v514_v49 = vpop.permute.xlu1 %513 }
  0xf2   : > { %v451_v50 = vpop.f32.mrf.mxu0 }
  0xf3   : > { %v452_v11 = vadd.f32 %v451_v50, %v319_v60  ;;  %v481_v24 = vmax.f32 %v448_v13, 0.0 }
  0xf4   : > { %v453_v51 = vpop.f32.mrf.mxu0 }
  0xf5   : > { %v454_v9 = vadd.f32 %v453_v51, %v319_v60  ;;  %v482_v21 = vmax.f32 %v452_v11, 0.0 }
  0xf6   : > { %v457_v52 = vpop.f32.mrf.mxu0 }
  0xf7   : > { %v458_v6 = vadd.f32 %v457_v52, %v324_v55  ;;  %v483_v19 = vmax.f32 %v454_v9, 0.0 }
  0xf8   : > { %v459_v54 = vpop.f32.mrf.mxu0 }
  0xf9   : > { %v460_v4 = vadd.f32 %v459_v54, %v324_v55  ;;  %v484_v16 = vmax.f32 %v458_v6, 0.0 }
  0xfa   : > { %v463_v56 = vpop.f32.mrf.mxu0 }
  0xfb   : > { %v464_v2 = vadd.f32 %v463_v56, %v329_v58  ;;  %v485_v14 = vmax.f32 %v460_v4, 0.0 }
  0xfc   : > { %v465_v57 = vpop.f32.mrf.mxu0 }
  0xfd   : > { %v466_v63 = vadd.f32 %v465_v57, %v329_v58  ;;  %v486_v12 = vmax.f32 %v464_v2, 0.0  ;;  %v519_v58 = vpop.permute.xlu0 %518 }
  0xfe   : > { %v469_v59 = vpop.f32.mrf.mxu0 }
  0xff   : > { %v470_v61 = vadd.f32 %v469_v59, %v334_v53  ;;  %v487_v10 = vmax.f32 %v466_v63, 0.0 }
 0x100   : > { %v471_v62 = vpop.f32.mrf.mxu0 }
 0x101   : > { %v472_v1 = vadd.f32 %v471_v62, %v334_v53  ;;  %v488_v7 = vmax.f32 %v470_v61, 0.0  ;;  %v529_v20 = vpop.permute.xlu0 %528 }
 0x103   : > { %v489_v5 = vmax.f32 %v472_v1, 0.0 }
 0x105   : > { %586 = vmatprep.subr.mxu1 %v489_v5 }
 0x106   : > { %587 = vmatpush1.msra.mxu1 %v488_v7  ;;  %v524_v7 = vpop.permute.xlu1 %523 }
 0x107   : > { %588 = vmatprep.subr.mxu1 %v487_v10 }
 0x108   : > { %589 = vmatpush1.msra.mxu1 %v486_v12 }
 0x109   : > { %590 = vmatprep.subr.mxu1 %v485_v14 }
 0x10a   : > { %591 = vmatpush1.msra.mxu1 %v484_v16 }
 0x10b   : > { %592 = vmatprep.subr.mxu1 %v483_v19 }
 0x10c   : > { %593 = vmatpush1.msra.mxu1 %v482_v21 }
 0x10d   : > { %594 = vmatprep.subr.mxu1 %v481_v24 }
 0x10e   : > { %595 = vmatpush1.msra.mxu1 %v480_v26 }
 0x10f   : > { %596 = vmatprep.subr.mxu1 %v479_v28 }
 0x110   : > { %597 = vmatpush1.msra.mxu1 %v478_v30 }
 0x111   : > { %598 = vmatprep.subr.mxu1 %v477_v31 }
 0x112   : > { %599 = vmatpush1.msra.mxu1 %v476_v32 }
 0x113   : > { %600 = vmatprep.subr.mxu1 %v475_v33  ;;  %v534_v33 = vpop.permute.xlu1 %533 }
 0x114   : > { %601 = vmatpush1.msra.mxu1 %v474_v34 }
 0x115   : > { %900 = vmatmul.mubr.msk.f32.vlgmr.msra.gmra.mxu1 %vm336_vm0, %v490_v35 }
 0x116   : > { %640 = vmatprep.mubr.f32.mxu1 %v980_v0 }
 0x119   : > { %901 = vmatmul.mubr.msk.f32.gmra.mxu1 %vm336_vm0, %v491_v36 }
 0x11a   : > { %646 = vmatprep.mubr.f32.mxu1 %v980_v0 }
 0x11d   : > { %902 = vmatmul.mubr.msk.f32.gmra.mxu1 %vm336_vm0, %v492_v37 }
 0x11e   : > { %652 = vmatprep.mubr.f32.mxu1 %v980_v0 }
 0x121   : > { %903 = vmatmul.mubr.msk.f32.gmra.mxu1 %vm336_vm0, %v493_v38 }
 0x122   : > { %658 = vmatprep.mubr.f32.mxu1 %v980_v0 }
 0x125   : > { %904 = vmatmul.mubr.msk.f32.gmra.mxu1 %vm336_vm0, %v494_v39 }
 0x126   : > { %664 = vmatprep.mubr.f32.mxu1 %v980_v0 }
 0x129   : > { %905 = vmatmul.mubr.msk.f32.gmra.mxu1 %vm336_vm0, %v495_v40 }
 0x12a   : > { %670 = vmatprep.mubr.f32.mxu1 %v980_v0 }
 0x12d   : > { %906 = vmatmul.mubr.msk.f32.gmra.mxu1 %vm336_vm0, %v496_v41 }
 0x12e   : > { %676 = vmatprep.mubr.f32.mxu1 %v980_v0 }
 0x131   : > { %907 = vmatmul.mubr.msk.f32.gmra.mxu1 %vm336_vm0, %v497_v42 }
 0x1d5   : > { %v636_v44 = vpop.f32.mrf.mxu1 }
 0x1d6   : > { %v637_v45 = vadd.f32 %v636_v44, %v509_v43 }
 0x1d7   : > { %v638_v46 = vpop.f32.mrf.mxu1 }
 0x1d8   : > { %v908_v47 = vadd.f32 -0.01, %v637_v45  ;;  %vm715_vm1 = vcmp.lt.f32.partialorder %v637_v45, -0.01  ;;  %v639_v48 = vadd.f32 %v638_v46, %v509_v43  ;;  %v731_v50 = vadd.f32 0.01, %v637_v45  ;;  %v539_v46 = vpop.permute.xlu0 %538 }
 0x1d9   : > { %v642_v51 = vpop.f32.mrf.mxu1  ;;  %vm683_vm3 = vcmp.gt.f32.partialorder %v637_v45, 0.01 }
 0x1da   : > { %v909_v0 = vadd.f32 -0.01, %v639_v48  ;;  %vm716_vm2 = vcmp.lt.f32.partialorder %v639_v48, -0.01  ;;  %v643_v52 = vadd.f32 %v642_v51, %v514_v49  ;;  %v747_v53 = vsel %vm715_vm1, %v731_v50, 0.0 }
 0x1db   : > { %v732_v54 = vadd.f32 0.01, %v639_v48  ;;  %v644_v55 = vpop.f32.mrf.mxu1  ;;  %v763_v56 = vsel %vm683_vm3, %v908_v47, %v747_v53  ;;  %vm684_vm6 = vcmp.gt.f32.partialorder %v639_v48, 0.01 }
 0x1dc   : > { %v910_v57 = vadd.f32 -0.01, %v643_v52  ;;  %vm717_vm5 = vcmp.lt.f32.partialorder %v643_v52, -0.01  ;;  %779 = vst [vmem:[%s1189_s6] sm:$0xff] %v763_v56  ;;  %v733_v60 = vadd.f32 0.01, %v643_v52  ;;  %v645_v61 = vadd.f32 %v644_v55, %v514_v49 }
 0x1dd   : > { %v748_v59 = vsel %vm716_vm2, %v732_v54, 0.0  ;;  %v648_v62 = vpop.f32.mrf.mxu1  ;;  %vm685_vm7 = vcmp.gt.f32.partialorder %v643_v52, 0.01 }
 0x1de   : > { %v764_v63 = vsel %vm684_vm6, %v909_v0, %v748_v59  ;;  %v649_v1 = vadd.f32 %v648_v62, %v519_v58  ;;  %v749_v2 = vsel %vm717_vm5, %v733_v60, 0.0  ;;  %v911_v3 = vadd.f32 -0.01, %v645_v61 }
 0x1df   : > { %781 = vst.msk [vmem:[%s1189_s6 + $0x8] sm:$0xff] %vm780_vm4, %v764_v63  ;;  %v650_v4 = vpop.f32.mrf.mxu1  ;;  %v765_v5 = vsel %vm685_vm7, %v910_v57, %v749_v2  ;;  %vm718_vm8 = vcmp.lt.f32.partialorder %v645_v61, -0.01  ;;  %v734_v6 = vadd.f32 0.01, %v645_v61 }
 0x1e0   : > { %782 = vst [vmem:[%s1189_s6 + $0x10] sm:$0xff] %v765_v5  ;;  %v912_v8 = vadd.f32 -0.01, %v649_v1  ;;  %vm719_vm9 = vcmp.lt.f32.partialorder %v649_v1, -0.01  ;;  %v651_v10 = vadd.f32 %v650_v4, %v519_v58  ;;  %v544_v58 = vpop.permute.xlu1 %543 }
 0x1e1   : > { %v735_v9 = vadd.f32 0.01, %v649_v1  ;;  %v654_v11 = vpop.f32.mrf.mxu1  ;;  %vm686_vm10 = vcmp.gt.f32.partialorder %v645_v61, 0.01  ;;  %v750_v12 = vsel %vm718_vm8, %v734_v6, 0.0 }
 0x1e2   : > { %v655_v13 = vadd.f32 %v654_v11, %v524_v7  ;;  %v766_v14 = vsel %vm686_vm10, %v911_v3, %v750_v12  ;;  %vm687_vm11 = vcmp.gt.f32.partialorder %v649_v1, 0.01  ;;  %v913_v16 = vadd.f32 -0.01, %v651_v10 }
 0x1e3   : > { %v751_v15 = vsel %vm719_vm9, %v735_v9, 0.0  ;;  %v656_v17 = vpop.f32.mrf.mxu1  ;;  %783 = vst.msk [vmem:[%s1189_s6 + $0x18] sm:$0xff] %vm780_vm4, %v766_v14  ;;  %vm720_vm12 = vcmp.lt.f32.partialorder %v651_v10, -0.01  ;;  %v736_v19 = vadd.f32 0.01, %v651_v10 }
 0x1e4   : > { %v767_v18 = vsel %vm687_vm11, %v912_v8, %v751_v15  ;;  %v914_v21 = vadd.f32 -0.01, %v655_v13  ;;  %vm721_vm13 = vcmp.lt.f32.partialorder %v655_v13, -0.01  ;;  %v737_v22 = vadd.f32 0.01, %v655_v13 }
 0x1e5   : > { %784 = vst [vmem:[%s1189_s6 + $0x20] sm:$0xff] %v767_v18  ;;  %v657_v23 = vadd.f32 %v656_v17, %v524_v7  ;;  %v660_v24 = vpop.f32.mrf.mxu1  ;;  %vm688_vm14 = vcmp.gt.f32.partialorder %v651_v10, 0.01  ;;  %v752_v25 = vsel %vm720_vm12, %v736_v19, 0.0  ;;  %vm689_vm15 = vcmp.gt.f32.partialorder %v655_v13, 0.01 }
 0x1e6   : > { %v661_v26 = vadd.f32 %v660_v24, %v529_v20  ;;  %v768_v27 = vsel %vm688_vm14, %v913_v16, %v752_v25  ;;  %v753_v28 = vsel %vm721_vm13, %v737_v22, 0.0 }
 0x1e7   : > { %v915_v29 = vadd.f32 -0.01, %v657_v23  ;;  %v662_v30 = vpop.f32.mrf.mxu1  ;;  %785 = vst.msk [vmem:[%s1189_s6 + $0x28] sm:$0xff] %vm780_vm4, %v768_v27  ;;  %v769_v31 = vsel %vm689_vm15, %v914_v21, %v753_v28  ;;  %vm722_vm0 = vcmp.lt.f32.partialorder %v657_v23, -0.01 }
 0x1e8   : > { %v738_v32 = vadd.f32 0.01, %v657_v23  ;;  %786 = vst [vmem:[%s1189_s6 + $0x30] sm:$0xff] %v769_v31  ;;  %v916_v34 = vadd.f32 -0.01, %v661_v26  ;;  %v663_v36 = vadd.f32 %v662_v30, %v529_v20 }
 0x1e9   : > { %vm723_vm1 = vcmp.lt.f32.partialorder %v661_v26, -0.01  ;;  %v739_v35 = vadd.f32 0.01, %v661_v26  ;;  %v666_v37 = vpop.f32.mrf.mxu1  ;;  %vm690_vm2 = vcmp.gt.f32.partialorder %v657_v23, 0.01 }
 0x1ea   : > { %v754_v38 = vsel %vm722_vm0, %v738_v32, 0.0  ;;  %v667_v39 = vadd.f32 %v666_v37, %v534_v33  ;;  %vm691_vm3 = vcmp.gt.f32.partialorder %v661_v26, 0.01  ;;  %v917_v42 = vadd.f32 -0.01, %v663_v36 }
 0x1eb   : > { %v770_v40 = vsel %vm690_vm2, %v915_v29, %v754_v38  ;;  %v755_v41 = vsel %vm723_vm1, %v739_v35, 0.0  ;;  %v668_v43 = vpop.f32.mrf.mxu1  ;;  %vm724_vm5 = vcmp.lt.f32.partialorder %v663_v36, -0.01  ;;  %v740_v45 = vadd.f32 0.01, %v663_v36 }
 0x1ec   : > { %787 = vst.msk [vmem:[%s1189_s6 + $0x38] sm:$0xff] %vm780_vm4, %v770_v40  ;;  %v771_v44 = vsel %vm691_vm3, %v916_v34, %v755_v41  ;;  %v918_v47 = vadd.f32 -0.01, %v667_v39  ;;  %vm725_vm6 = vcmp.lt.f32.partialorder %v667_v39, -0.01  ;;  %v669_v49 = vadd.f32 %v668_v43, %v534_v33 }
 0x1ed   : > { %788 = vst [vmem:[%s1189_s6 + $0x40] sm:$0xff] %v771_v44  ;;  %v741_v48 = vadd.f32 0.01, %v667_v39  ;;  %v672_v50 = vpop.f32.mrf.mxu1  ;;  %vm692_vm7 = vcmp.gt.f32.partialorder %v663_v36, 0.01  ;;  %v756_v51 = vsel %vm724_vm5, %v740_v45, 0.0 }
 0x1ee   : > { %v673_v0 = vadd.f32 %v672_v50, %v539_v46  ;;  %v772_v52 = vsel %vm692_vm7, %v917_v42, %v756_v51  ;;  %vm693_vm8 = vcmp.gt.f32.partialorder %v667_v39, 0.01  ;;  %v919_v54 = vadd.f32 -0.01, %v669_v49 }
 0x1ef   : > { %v757_v53 = vsel %vm725_vm6, %v741_v48, 0.0  ;;  %v674_v55 = vpop.f32.mrf.mxu1  ;;  %789 = vst.msk [vmem:[%s1189_s6 + $0x48] sm:$0xff] %vm780_vm4, %v772_v52  ;;  %vm726_vm9 = vcmp.lt.f32.partialorder %v669_v49, -0.01  ;;  %v742_v57 = vadd.f32 0.01, %v669_v49 }
 0x1f0   : > { %v773_v56 = vsel %vm693_vm8, %v918_v47, %v757_v53  ;;  %v920_v59 = vadd.f32 -0.01, %v673_v0  ;;  %vm727_vm10 = vcmp.lt.f32.partialorder %v673_v0, -0.01  ;;  %v743_v60 = vadd.f32 0.01, %v673_v0 }
 0x1f1   : > { %790 = vst [vmem:[%s1189_s6 + $0x50] sm:$0xff] %v773_v56  ;;  %v675_v61 = vadd.f32 %v674_v55, %v539_v46  ;;  %v678_v62 = vpop.f32.mrf.mxu1  ;;  %vm694_vm11 = vcmp.gt.f32.partialorder %v669_v49, 0.01  ;;  %v758_v63 = vsel %vm726_vm9, %v742_v57, 0.0  ;;  %vm695_vm12 = vcmp.gt.f32.partialorder %v673_v0, 0.01 }
 0x1f2   : > { %v679_v1 = vadd.f32 %v678_v62, %v544_v58  ;;  %v774_v2 = vsel %vm694_vm11, %v919_v54, %v758_v63  ;;  %v759_v3 = vsel %vm727_vm10, %v743_v60, 0.0 }
 0x1f3   : > { %v921_v4 = vadd.f32 -0.01, %v675_v61  ;;  %v680_v5 = vpop.f32.mrf.mxu1  ;;  %791 = vst.msk [vmem:[%s1189_s6 + $0x58] sm:$0xff] %vm780_vm4, %v774_v2  ;;  %v775_v6 = vsel %vm695_vm12, %v920_v59, %v759_v3  ;;  %vm728_vm13 = vcmp.lt.f32.partialorder %v675_v61, -0.01 }
 0x1f4   : > { %v744_v7 = vadd.f32 0.01, %v675_v61  ;;  %792 = vst [vmem:[%s1189_s6 + $0x60] sm:$0xff] %v775_v6  ;;  %v922_v8 = vadd.f32 -0.01, %v679_v1  ;;  %v681_v10 = vadd.f32 %v680_v5, %v544_v58 }
 0x1f5   : > { %vm729_vm14 = vcmp.lt.f32.partialorder %v679_v1, -0.01  ;;  %v745_v9 = vadd.f32 0.01, %v679_v1  ;;  %vm696_vm15 = vcmp.gt.f32.partialorder %v675_v61, 0.01 }
 0x1f6   : > { %v760_v11 = vsel %vm728_vm13, %v744_v7, 0.0  ;;  %vm697_vm0 = vcmp.gt.f32.partialorder %v679_v1, 0.01  ;;  %v923_v14 = vadd.f32 -0.01, %v681_v10 }
 0x1f7   : > { %v776_v12 = vsel %vm696_vm15, %v921_v4, %v760_v11  ;;  %v761_v13 = vsel %vm729_vm14, %v745_v9, 0.0  ;;  %vm730_vm1 = vcmp.lt.f32.partialorder %v681_v10, -0.01  ;;  %v746_v16 = vadd.f32 0.01, %v681_v10 }
 0x1f8   : > { %793 = vst.msk [vmem:[%s1189_s6 + $0x68] sm:$0xff] %vm780_vm4, %v776_v12  ;;  %v777_v15 = vsel %vm697_vm0, %v922_v8, %v761_v13  ;;  %vm698_vm2 = vcmp.gt.f32.partialorder %v681_v10, 0.01 }
 0x1f9   : > { %794 = vst [vmem:[%s1189_s6 + $0x70] sm:$0xff] %v777_v15  ;;  %v762_v17 = vsel %vm730_vm1, %v746_v16, 0.0 }
 0x1fa   : > { %v778_v18 = vsel %vm698_vm2, %v923_v14, %v762_v17 }
 0x1fb   : > { %795 = vst.msk [vmem:[%s1189_s6 + $0x78] sm:$0xff] %vm780_vm4, %v778_v18 }
 0x1fc PF: > { %s15_s20 = sadd.s32 1, %s978_s20   ;;  %s1230_s18 = smov %s974_s19 }
 0x1fd   : > { %p12_p5 = scmp.ge.s32.totalorder %s15_s20, 4   ;;  %s1231_s19 = smov %s1233_s21 }
 0x1ff   :  { %14 = sbr.rel (!%p12_p5) target bundleno = 2 (0x2), region = 70 }

</bundles_post_ra>
